<compile_context>
chip_gen: v7x
topology: tpu7x:2x2x1
jax: 0.10.0
libtpu: 0.0.40
codegen_flags: <defaults>
</compile_context>

<pallas_src>
import functools
import math

import numpy as np
import jax
import jax.numpy as jnp
from jax import lax
from jax.experimental import pallas as pl
from jax.experimental.pallas import tpu as pltpu

WINDOW_SIZE = 11
SIGMA = 1.5
C1 = 0.01 ** 2
C2 = 0.03 ** 2
_MiB = 1024 * 1024


def _gaussian_1d(window_size=WINDOW_SIZE, sigma=SIGMA):
    # Mirrors gaussian() from the PyTorch module (float32, normalized to sum 1).
    g = np.array(
        [math.exp(-(x - window_size // 2) ** 2 / float(2 * sigma ** 2))
         for x in range(window_size)], dtype=np.float32)
    return (g / g.sum()).astype(np.float32)


def _band_matrix(n, g):
    """Banded Toeplitz matrix M with M[a, b] = g[b - a + pad] (zero elsewhere).

    Encodes a 1D 'same' zero-padded correlation with the (symmetric) Gaussian.
    """
    ws = g.shape[0]
    pad = ws // 2
    m = np.zeros((n, n), np.float32)
    for a in range(n):
        for b in range(max(0, a - pad), min(n, a + pad + 1)):
            m[a, b] = g[b - a + pad]
    return m


def _round_up(x, m):
    return ((x + m - 1) // m) * m


def _ssim_block_kernel(colm_ref, rowm_ref, i1_ref, i2_ref, out_ref, acc_ref,
                       *, P, H, W, NC, n_inner, accw, fold_planes_into_lanes):
    """One grid step = P channel planes, fully batched on the MXU."""
    o = pl.program_id(0)
    i = pl.program_id(1)
    blk = o * n_inner + i
    B = 5 * P

    @pl.when(i == 0)
    def _init():
        acc_ref[...] = jnp.zeros_like(acc_ref)

    colm = colm_ref[...]          # (H, H) band matrix (height pass)
    rowm = rowm_ref[...]          # (W, W) band matrix (width pass)
    a1 = i1_ref[...]              # (P, H, W) float32
    a2 = i2_ref[...]

    # 5 SSIM fields, field-major along the batch axis; squares/products in f32 (VPU).
    fields = jnp.concatenate([a1, a2, a1 * a1, a2 * a2, a1 * a2], axis=0)   # (5P,H,W)

    # ---- width pass: ONE (5P*H, W) @ (W, W) MXU matmul (zero padding in rowm) ----
    t = jnp.dot(fields.reshape(B * H, W), rowm,
                preferred_element_type=jnp.float32)                         # (5P*H, W)
    t = t.reshape(B, H, W)

    if fold_planes_into_lanes:
        # ---- height pass: fold (batch, W) into lanes -> ONE (H,H)@(H,5P*W) dot ----
        if hasattr(pltpu, "einshape"):
            th = pltpu.einshape("bhw->hbw", t)                              # (H,5P,W)
        else:
            th = jnp.transpose(t, (1, 0, 2))
        g = jnp.dot(colm, th.reshape(H, B * W),
                    preferred_element_type=jnp.float32)                     # (H, 5P*W)
        PW = P * W
        mu1 = g[:, 0 * PW:1 * PW]
        mu2 = g[:, 1 * PW:2 * PW]
        e11 = g[:, 2 * PW:3 * PW]
        e22 = g[:, 3 * PW:4 * PW]
        e12 = g[:, 4 * PW:5 * PW]
        plane = lax.broadcasted_iota(jnp.int32, (H, PW), 1) // W            # lane->plane
    else:
        # Fallback height pass: batched 3D matmul (single op, 5P MXU pushes), no
        # mid-kernel relayout needed.
        colm_b = jnp.broadcast_to(colm, (B, H, H))
        g = jnp.einsum("bir,brj->bij", colm_b, t,
                       preferred_element_type=jnp.float32)                  # (5P, H, W)
        mu1 = g[0 * P:1 * P]
        mu2 = g[1 * P:2 * P]
        e11 = g[2 * P:3 * P]
        e22 = g[3 * P:4 * P]
        e12 = g[4 * P:5 * P]
        plane = lax.broadcasted_iota(jnp.int32, (P, H, W), 0)

    mu1_sq = mu1 * mu1
    mu2_sq = mu2 * mu2
    mu1_mu2 = mu1 * mu2
    sigma1_sq = e11 - mu1_sq
    sigma2_sq = e22 - mu2_sq
    sigma12 = e12 - mu1_mu2

    num = (2.0 * mu1_mu2 + C1) * (2.0 * sigma12 + C2)
    den = (mu1_sq + mu2_sq + C1) * (sigma1_sq + sigma2_sq + C2)

    # Approx reciprocal on the EUP + one Newton-Raphson step on the VPU.
    r = pl.reciprocal(den, approx=True)
    r = r * (2.0 - den * r)
    ssim = num * r

    # Mask out zero-padded planes (they would otherwise contribute SSIM=1 per pixel).
    valid = (plane + blk * P) < NC
    ssim = jnp.where(valid, ssim, 0.0)

    # One block-wide sublane reduction into a lane-dense (1, accw>=128) accumulator.
    ssim2d = ssim if ssim.ndim == 2 else ssim.reshape(P * H, W)
    part = jnp.sum(ssim2d, axis=0, keepdims=True)                           # (1, cols)
    cols = part.shape[1]
    if cols < accw:
        part = jnp.concatenate(
            [part, jnp.zeros((1, accw - cols), jnp.float32)], axis=1)
    acc_ref[...] = acc_ref[...] + part

    @pl.when(i == n_inner - 1)
    def _fini():
        total = jnp.sum(acc_ref[...], axis=1, keepdims=True)                # (1, 1)
        out_ref[0] = jnp.broadcast_to(total, (1, 128))


def ssim_loss_pallas(img1, img2, window_size=WINDOW_SIZE, sigma=SIGMA):
    """Pallas equivalent of SSIMLoss.forward(img1, img2) = 1 - mean(ssim_map)."""
    N, C, H, W = img1.shape
    NC = N * C
    g = _gaussian_1d(window_size, sigma)
    col_mat = jnp.asarray(_band_matrix(H, g))       # height pass: colm @ x
    row_mat = jnp.asarray(_band_matrix(W, g).T)     # width pass:  x @ rowm

    x1 = img1.astype(jnp.float32).reshape(NC, H, W)
    x2 = img2.astype(jnp.float32).reshape(NC, H, W)

    # ---- generation-aware VMEM budget (v5e/v6e: 128 MiB phys, v7x: 64 MiB) --------
    try:
        info = pltpu.get_tpu_info()
        vmem_phys = int(getattr(info, "vmem_capacity_bytes", 64 * _MiB) or 64 * _MiB)
    except Exception:
        vmem_phys = 64 * _MiB
    vmem_limit = 64 * _MiB if vmem_phys >= 128 * _MiB else 32 * _MiB

    # ---- plane packing (P planes per grid step) ------------------------------------
    n_outer = 2                                     # unconditional megacore split
    per_core = -(-NC // n_outer)                    # ceil
    p_mxu = max(1, -(-256 // (5 * H)))              # 5*P*H >= 256 rows on the MXU
    const_bytes = 2 * 4 * (H * H + W * W)           # double-buffered band matrices
    budget = max((vmem_limit * 3) // 5 - const_bytes, 1 << 16)
    bytes_per_plane = (2 * 2 + 20) * H * W * 4      # in double-buffers + f32 temporaries
    p_cap = max(1, budget // bytes_per_plane)
    P = int(max(1, min(p_cap, per_core, max(p_mxu, -(-per_core // 8)))))
    n_inner = -(-per_core // P)
    NC_pad = n_outer * n_inner * P

    if NC_pad > NC:                                 # remainder handled by in-kernel mask
        pad = jnp.zeros((NC_pad - NC, H, W), jnp.float32)
        x1 = jnp.concatenate([x1, pad], axis=0)
        x2 = jnp.concatenate([x2, pad], axis=0)

    def run(fold):
        cols = P * W if fold else W
        accw = max(128, _round_up(cols, 128))
        kernel = functools.partial(
            _ssim_block_kernel, P=P, H=H, W=W, NC=NC, n_inner=n_inner,
            accw=accw, fold_planes_into_lanes=fold)
        return pl.pallas_call(
            kernel,
            out_shape=jax.ShapeDtypeStruct((n_outer, 1, 128), jnp.float32),
            grid_spec=pltpu.PrefetchScalarGridSpec(
                num_scalar_prefetch=0,
                grid=(n_outer, n_inner),
                in_specs=[
                    # Band matrices: constant block index -> fetched once, VMEM-resident.
                    pl.BlockSpec((H, H), lambda o, i: (0, 0)),
                    pl.BlockSpec((W, W), lambda o, i: (0, 0)),
                    pl.BlockSpec((P, H, W), lambda o, i: (o * n_inner + i, 0, 0)),
                    pl.BlockSpec((P, H, W), lambda o, i: (o * n_inner + i, 0, 0)),
                ],
                out_specs=pl.BlockSpec((1, 1, 128), lambda o, i: (o, 0, 0)),
                scratch_shapes=[pltpu.VMEM((1, accw), jnp.float32)],
            ),
            compiler_params=pltpu.CompilerParams(
                dimension_semantics=("parallel", "arbitrary"),
                vmem_limit_bytes=vmem_limit,
            ),
        )(col_mat, row_mat, x1, x2)

    try:
        partials = jax.block_until_ready(run(fold=True))
    except Exception:
        # Relayout-free fallback (batched 3D height pass) for older Mosaic lowerings.
        partials = run(fold=False)

    count = np.float32(NC * H * W)
    return jnp.float32(1.0) - jnp.sum(partials[:, 0, 0]) / count


def ssim_loss_ref(img1, img2, window_size=WINDOW_SIZE, sigma=SIGMA):
    """Pure-JAX reference (grouped conv, HIGHEST precision) mirroring _ssim()."""
    N, C, H, W = img1.shape
    g = _gaussian_1d(window_size, sigma)
    w2d = np.outer(g, g).astype(np.float32)
    w = jnp.asarray(
        np.ascontiguousarray(
            np.broadcast_to(w2d, (C, 1, window_size, window_size))),
        dtype=jnp.float32)

    def conv(x):
        return lax.conv_general_dilated(
            x, w, (1, 1), "SAME",
            feature_group_count=C,
            dimension_numbers=("NCHW", "OIHW", "NCHW"),
            precision=lax.Precision.HIGHEST)

    x1 = img1.astype(jnp.float32)
    x2 = img2.astype(jnp.float32)
    mu1, mu2 = conv(x1), conv(x2)
    mu1_sq, mu2_sq, mu1_mu2 = mu1 * mu1, mu2 * mu2, mu1 * mu2
    sigma1_sq = conv(x1 * x1) - mu1_sq
    sigma2_sq = conv(x2 * x2) - mu2_sq
    sigma12 = conv(x1 * x2) - mu1_mu2
    ssim_map = ((2 * mu1_mu2 + C1) * (2 * sigma12 + C2)
                / ((mu1_sq + mu2_sq + C1) * (sigma1_sq + sigma2_sq + C2)))
    return 1.0 - jnp.mean(ssim_map)


if __name__ == "__main__":
    key = jax.random.PRNGKey(0)
    k1, k2 = jax.random.split(key)
    # Small shapes consistent with the trainer's image tensors (NCHW).
    x_a = jax.random.normal(k1, (2, 4, 16, 16), jnp.float32)
    x_b = jax.random.normal(k2, (2, 4, 16, 16), jnp.float32)

    loss = jax.block_until_ready(ssim_loss_pallas(x_a, x_b))
    ref = jax.block_until_ready(ssim_loss_ref(x_a, x_b))

    np.testing.assert_allclose(np.asarray(loss), np.asarray(ref),
                               rtol=1e-4, atol=5e-5)
    print("KERNEL_OK")
</pallas_src>

<mosaic_0001>
module attributes {stable_mosaic.version = 11 : i64} {
  func.func @_ssim_block_kernel(%arg0: i32, %arg1: i32, %arg2: memref<16x16xf32, #tpu.memory_space<vmem>>, %arg3: memref<16x16xf32, #tpu.memory_space<vmem>>, %arg4: memref<4x16x16xf32, #tpu.memory_space<vmem>>, %arg5: memref<4x16x16xf32, #tpu.memory_space<vmem>>, %arg6: memref<1x1x128xf32, #tpu.memory_space<vmem>>, %arg7: memref<1x128xf32, #tpu.memory_space<vmem>>) attributes {dimension_semantics = [#tpu.dimension_semantics<parallel>, #tpu.dimension_semantics<arbitrary>], iteration_bounds = array<i64: 2, 1>, scalar_prefetch = 0 : i64, scratch_operands = 1 : i64, tpu.core_type = #tpu.core_type<tc>, window_params = [{pipeline_mode = #tpu.pipeline_mode<synchronous>, transform_indices = @transform_0, window_bounds = array<i64: 16, 16>}, {pipeline_mode = #tpu.pipeline_mode<synchronous>, transform_indices = @transform_1, window_bounds = array<i64: 16, 16>}, {transform_indices = @transform_2, window_bounds = array<i64: 4, 16, 16>}, {transform_indices = @transform_3, window_bounds = array<i64: 4, 16, 16>}, {transform_indices = @transform_4, window_bounds = array<i64: 1, 1, 128>}]} {
    %c1_i32 = arith.constant 1 : i32
    %0 = arith.muli %arg0, %c1_i32 : i32
    %1 = arith.addi %0, %arg1 : i32
    %c0_i32 = arith.constant 0 : i32
    %2 = arith.cmpi eq, %arg1, %c0_i32 : i32
    %3 = arith.extui %2 : i1 to i32
    %c0_i32_0 = arith.constant 0 : i32
    %4 = arith.cmpi ne, %3, %c0_i32_0 : i32
    scf.if %4 {
      %cst_27 = arith.constant 0.000000e+00 : f32
      %71 = vector.broadcast %cst_27 : f32 to vector<1x128xf32>
      %c0_28 = arith.constant 0 : index
      %c0_29 = arith.constant 0 : index
      %72 = vector.load %arg7[%c0_28, %c0_29] : memref<1x128xf32, #tpu.memory_space<vmem>>, vector<1x128xf32>
      tpu.vector_store %arg7[%c0_28, %c0_29], %71 {strides = array<i32>} : memref<1x128xf32, #tpu.memory_space<vmem>>, vector<1x128xf32>,
    } else {
    }
    %c0 = arith.constant 0 : index
    %c0_1 = arith.constant 0 : index
    %5 = vector.load %arg2[%c0, %c0_1] : memref<16x16xf32, #tpu.memory_space<vmem>>, vector<16x16xf32>
    %c0_2 = arith.constant 0 : index
    %c0_3 = arith.constant 0 : index
    %6 = vector.load %arg3[%c0_2, %c0_3] : memref<16x16xf32, #tpu.memory_space<vmem>>, vector<16x16xf32>
    %c0_4 = arith.constant 0 : index
    %c0_5 = arith.constant 0 : index
    %c0_6 = arith.constant 0 : index
    %7 = vector.load %arg4[%c0_4, %c0_5, %c0_6] : memref<4x16x16xf32, #tpu.memory_space<vmem>>, vector<4x16x16xf32>
    %c0_7 = arith.constant 0 : index
    %c0_8 = arith.constant 0 : index
    %c0_9 = arith.constant 0 : index
    %8 = vector.load %arg5[%c0_7, %c0_8, %c0_9] : memref<4x16x16xf32, #tpu.memory_space<vmem>>, vector<4x16x16xf32>
    %9 = arith.mulf %7, %7 : vector<4x16x16xf32>
    %10 = arith.mulf %8, %8 : vector<4x16x16xf32>
    %11 = arith.mulf %7, %8 : vector<4x16x16xf32>
    %12 = tpu.concatenate %7, %8, %9, %10, %11 in 0 : vector<4x16x16xf32>, vector<4x16x16xf32>, vector<4x16x16xf32>, vector<4x16x16xf32>, vector<4x16x16xf32> -> vector<20x16x16xf32>
    %13 = vector.shape_cast %12 : vector<20x16x16xf32> to vector<320x16xf32>
    %cst = arith.constant dense<0.000000e+00> : vector<320x16xf32>
    %14 = tpu.matmul %13, %6, %cst {dimension_numbers = #tpu.dot_dimension_numbers<[1], [0], [0], [1], [0, 0, 1, 1], [], []>} : vector<320x16xf32>, vector<16x16xf32>, vector<320x16xf32> -> vector<320x16xf32>
    %15 = vector.shape_cast %14 : vector<320x16xf32> to vector<20x16x16xf32>
    %16 = vector.shape_cast %5 : vector<16x16xf32> to vector<1x16x16xf32>
    %17 = vector.broadcast %16 : vector<1x16x16xf32> to vector<20x16x16xf32>
    "tpu.trace_start"() <{level = 10 : i32, message = "bir,brj->bij"}> : () -> ()
    %cst_10 = arith.constant dense<0.000000e+00> : vector<20x16x16xf32>
    %18 = tpu.matmul %17, %15, %cst_10 {dimension_numbers = #tpu.dot_dimension_numbers<[2], [1], [1], [2], [0, 0, 0, 1, 1, 2], [0], [0]>} : vector<20x16x16xf32>, vector<20x16x16xf32>, vector<20x16x16xf32> -> vector<20x16x16xf32>
    "tpu.trace_stop"() : () -> ()
    %19 = vector.extract_strided_slice %18 {offsets = [0, 0, 0], sizes = [4, 16, 16], strides = [1, 1, 1]} : vector<20x16x16xf32> to vector<4x16x16xf32>
    %20 = vector.extract_strided_slice %18 {offsets = [4, 0, 0], sizes = [4, 16, 16], strides = [1, 1, 1]} : vector<20x16x16xf32> to vector<4x16x16xf32>
    %21 = vector.extract_strided_slice %18 {offsets = [8, 0, 0], sizes = [4, 16, 16], strides = [1, 1, 1]} : vector<20x16x16xf32> to vector<4x16x16xf32>
    %22 = vector.extract_strided_slice %18 {offsets = [12, 0, 0], sizes = [4, 16, 16], strides = [1, 1, 1]} : vector<20x16x16xf32> to vector<4x16x16xf32>
    %23 = vector.extract_strided_slice %18 {offsets = [16, 0, 0], sizes = [4, 16, 16], strides = [1, 1, 1]} : vector<20x16x16xf32> to vector<4x16x16xf32>
    %24 = tpu.iota {dimensions = array<i32: 0>} : vector<4x16x16xi32>
    %25 = arith.mulf %19, %19 : vector<4x16x16xf32>
    %26 = arith.mulf %20, %20 : vector<4x16x16xf32>
    %27 = arith.mulf %19, %20 : vector<4x16x16xf32>
    %28 = arith.subf %21, %25 : vector<4x16x16xf32>
    %29 = arith.subf %22, %26 : vector<4x16x16xf32>
    %30 = arith.subf %23, %27 : vector<4x16x16xf32>
    %cst_11 = arith.constant 2.000000e+00 : f32
    %31 = vector.broadcast %cst_11 : f32 to vector<4x16x16xf32>
    %32 = arith.mulf %31, %27 : vector<4x16x16xf32>
    %cst_12 = arith.constant 9.99999974E-5 : f32
    %33 = vector.broadcast %cst_12 : f32 to vector<4x16x16xf32>
    %34 = arith.addf %32, %33 : vector<4x16x16xf32>
    %cst_13 = arith.constant 2.000000e+00 : f32
    %35 = vector.broadcast %cst_13 : f32 to vector<4x16x16xf32>
    %36 = arith.mulf %35, %30 : vector<4x16x16xf32>
    %cst_14 = arith.constant 8.99999984E-4 : f32
    %37 = vector.broadcast %cst_14 : f32 to vector<4x16x16xf32>
    %38 = arith.addf %36, %37 : vector<4x16x16xf32>
    %39 = arith.mulf %34, %38 : vector<4x16x16xf32>
    %40 = arith.addf %25, %26 : vector<4x16x16xf32>
    %cst_15 = arith.constant 9.99999974E-5 : f32
    %41 = vector.broadcast %cst_15 : f32 to vector<4x16x16xf32>
    %42 = arith.addf %40, %41 : vector<4x16x16xf32>
    %43 = arith.addf %28, %29 : vector<4x16x16xf32>
    %cst_16 = arith.constant 8.99999984E-4 : f32
    %44 = vector.broadcast %cst_16 : f32 to vector<4x16x16xf32>
    %45 = arith.addf %43, %44 : vector<4x16x16xf32>
    %46 = arith.mulf %42, %45 : vector<4x16x16xf32>
    %47 = tpu.reciprocal %46 {approx = true} : vector<4x16x16xf32> -> vector<4x16x16xf32>
    %48 = arith.mulf %46, %47 : vector<4x16x16xf32>
    %cst_17 = arith.constant 2.000000e+00 : f32
    %49 = vector.broadcast %cst_17 : f32 to vector<4x16x16xf32>
    %50 = arith.subf %49, %48 : vector<4x16x16xf32>
    %51 = arith.mulf %47, %50 : vector<4x16x16xf32>
    %52 = arith.mulf %39, %51 : vector<4x16x16xf32>
    %c4_i32 = arith.constant 4 : i32
    %53 = arith.muli %1, %c4_i32 : i32
    %54 = vector.broadcast %53 : i32 to vector<4x16x16xi32>
    %55 = arith.addi %24, %54 : vector<4x16x16xi32>
    %c8_i32 = arith.constant 8 : i32
    %56 = vector.broadcast %c8_i32 : i32 to vector<4x16x16xi32>
    %57 = arith.cmpi slt, %55, %56 : vector<4x16x16xi32>
    %cst_18 = arith.constant 0.000000e+00 : f32
    %58 = vector.broadcast %cst_18 : f32 to vector<4x16x16xf32>
    %59 = arith.select %57, %52, %58 : vector<4x16x16xi1>, vector<4x16x16xf32>
    %60 = vector.shape_cast %59 : vector<4x16x16xf32> to vector<64x16xf32>
    %cst_19 = arith.constant dense<0.000000e+00> : vector<16xf32>
    %61 = vector.multi_reduction <add>, %60, %cst_19 [0] : vector<64x16xf32> to vector<16xf32>
    %62 = vector.shape_cast %61 : vector<16xf32> to vector<1x16xf32>
    %cst_20 = arith.constant 0.000000e+00 : f32
    %63 = vector.broadcast %cst_20 : f32 to vector<1x112xf32>
    %64 = tpu.concatenate %62, %63 in 1 : vector<1x16xf32>, vector<1x112xf32> -> vector<1x128xf32>
    %c0_21 = arith.constant 0 : index
    %c0_22 = arith.constant 0 : index
    %65 = vector.load %arg7[%c0_21, %c0_22] : memref<1x128xf32, #tpu.memory_space<vmem>>, vector<1x128xf32>
    %66 = arith.addf %65, %64 : vector<1x128xf32>
    %c0_23 = arith.constant 0 : index
    %c0_24 = arith.constant 0 : index
    %67 = vector.load %arg7[%c0_23, %c0_24] : memref<1x128xf32, #tpu.memory_space<vmem>>, vector<1x128xf32>
    tpu.vector_store %arg7[%c0_23, %c0_24], %66 {strides = array<i32>} : memref<1x128xf32, #tpu.memory_space<vmem>>, vector<1x128xf32>,
    %c0_i32_25 = arith.constant 0 : i32
    %68 = arith.cmpi eq, %arg1, %c0_i32_25 : i32
    %69 = arith.extui %68 : i1 to i32
    %c0_i32_26 = arith.constant 0 : i32
    %70 = arith.cmpi ne, %69, %c0_i32_26 : i32
    scf.if %70 {
      %c0_27 = arith.constant 0 : index
      %c0_28 = arith.constant 0 : index
      %71 = vector.load %arg7[%c0_27, %c0_28] : memref<1x128xf32, #tpu.memory_space<vmem>>, vector<1x128xf32>
      %cst_29 = arith.constant dense<0.000000e+00> : vector<1xf32>
      %72 = vector.multi_reduction <add>, %71, %cst_29 [1] : vector<1x128xf32> to vector<1xf32>
      %73 = vector.shape_cast %72 : vector<1xf32> to vector<1x1xf32>
      %74 = vector.shape_cast %73 : vector<1x1xf32> to vector<1x1xf32>
      %75 = vector.broadcast %74 : vector<1x1xf32> to vector<1x128xf32>
      %c0_30 = arith.constant 0 : index
      %c0_31 = arith.constant 0 : index
      %c0_32 = arith.constant 0 : index
      %76 = vector.load %arg6[%c0_30, %c0_31, %c0_32] : memref<1x1x128xf32, #tpu.memory_space<vmem>>, vector<1x1x128xf32>
      %77 = vector.shape_cast %76 : vector<1x1x128xf32> to vector<1x128xf32>
      %78 = vector.shape_cast %75 : vector<1x128xf32> to vector<1x1x128xf32>
      tpu.vector_store %arg6[%c0_30, %c0_31, %c0_32], %78 {strides = array<i32>} : memref<1x1x128xf32, #tpu.memory_space<vmem>>, vector<1x1x128xf32>,
    } else {
    }
    return
  }
  func.func @transform_0(%arg0: i32, %arg1: i32) -> (i32, i32) {
    %c0_i32 = arith.constant 0 : i32
    %c0_i32_0 = arith.constant 0 : i32
    %c0_i32_1 = arith.constant 0 : i32
    return %c0_i32, %c0_i32_0 : i32, i32
  }
  func.func @transform_1(%arg0: i32, %arg1: i32) -> (i32, i32) {
    %c0_i32 = arith.constant 0 : i32
    %c0_i32_0 = arith.constant 0 : i32
    %c0_i32_1 = arith.constant 0 : i32
    return %c0_i32, %c0_i32_0 : i32, i32
  }
  func.func @transform_2(%arg0: i32, %arg1: i32) -> (i32, i32, i32) {
    %c1_i32 = arith.constant 1 : i32
    %0 = arith.muli %arg0, %c1_i32 : i32
    %1 = arith.addi %0, %arg1 : i32
    %c0_i32 = arith.constant 0 : i32
    %c0_i32_0 = arith.constant 0 : i32
    %c0_i32_1 = arith.constant 0 : i32
    return %1, %c0_i32, %c0_i32_0 : i32, i32, i32
  }
  func.func @transform_3(%arg0: i32, %arg1: i32) -> (i32, i32, i32) {
    %c1_i32 = arith.constant 1 : i32
    %0 = arith.muli %arg0, %c1_i32 : i32
    %1 = arith.addi %0, %arg1 : i32
    %c0_i32 = arith.constant 0 : i32
    %c0_i32_0 = arith.constant 0 : i32
    %c0_i32_1 = arith.constant 0 : i32
    return %1, %c0_i32, %c0_i32_0 : i32, i32, i32
  }
  func.func @transform_4(%arg0: i32, %arg1: i32) -> (i32, i32, i32) {
    %c0_i32 = arith.constant 0 : i32
    %c0_i32_0 = arith.constant 0 : i32
    %c0_i32_1 = arith.constant 0 : i32
    return %arg0, %c0_i32, %c0_i32_0 : i32, i32, i32
  }
}

</mosaic_0001>

<bundles_post_ra>
// kernel: tpu_custom_call.1
= control target key start
LH: loop header
LB: loop body
LE: loop exit
PB: predicated region body
PF: predicated region fallthrough
CT: control target
= control target key end

     0   :  { %s4075_s0 = inlined_call_operand.hbm [shape: f32[16,16], index: 0, kind: input, shape index: {}]   ;;  %s4076_s1 = inlined_call_operand.hbm [shape: f32[16,16], index: 1, kind: input, shape index: {}]   ;;  %s4077_s2 = inlined_call_operand.hbm [shape: f32[8,16,16], index: 2, kind: input, shape index: {}]   ;;  %s4078_s3 = inlined_call_operand.hbm [shape: f32[8,16,16], index: 3, kind: input, shape index: {}]   ;;  %s4079_s4 = inlined_call_operand.hbm [shape: f32[2,1,128], index: 4, kind: output, shape index: {}]  }
   0x1   :  { %4093 = sst [smem:[#allocation20_spill]] %s4075_s0 }
   0x2   :  { %4094 = sst [smem:[#allocation21_spill]] %s4077_s2 }
   0x3   :  { %4095 = sst [smem:[#allocation22_spill]] %s4079_s4 }
   0x4   :  { %9 = vsyncpa [#allocation4], 0 }
   0x5   :  { %10 = vsyncpa [#allocation7], 0 }
   0x6   :  { %11 = vsyncpa [#allocation5], 0 }
   0x7   :  { %13 = vsyncpa [#allocation5 + $0x1], 0  ;;  %s3457_s15 = smov 0   ;;  %s3459_s16 = smov 0  }
   0x8   :  { %s3461_s17 = smov 0   ;;  %s3463_s18 = smov 0  }
   0x9   :  { %s3465_s19 = smov 0   ;;  %s3467_s20 = smov 0  }
   0xa LB: > { %4096 = sst [smem:[#allocation15_spill]] %s3402_s15  ;;  %s3488_s21 = sadd.s32 4294967295, %s3422_s20   ;;  %s3422_s20 = sphi %s3467_s20, %s19_s20   ;;  %s3418_s19 = sphi %s3465_s19, %s4135_s19   ;;  %s3414_s18 = sphi %s3463_s18, %s4134_s18   ;;  %s3410_s17 = sphi %s3461_s17, %s4130_s17   ;;  %s3406_s16 = sphi %s3459_s16, %s4133_s16   ;;  %s3402_s15 = sphi %s3457_s15, %s4132_s15  }
   0xb   : > { %4097 = sst [smem:[#allocation16_spill]] %s3410_s17  ;;  %s2593_s22 = sadd.s32 4294967294, %s3422_s20  }
   0xc   : > { %p89_p0 = scmp.ne.s32.totalorder %s3410_s17, %s3406_s16  ;;  %p90_p1 = scmp.eq.s32.totalorder %s3422_s20, 0 }
   0xd   : > { %p95_p2 = scmp.ne.s32.totalorder %s3406_s16, %s3402_s15  ;;  %p4080_p3 = scmp.eq.s32.totalorder %s3488_s21, 0 }
   0xe   : > { %p147_p4 = scmp.eq.s32.totalorder %s3488_s21, 1  ;;  %p3499_p5 = por %p90_p1, %p89_p0 }
   0xf   : > { %p153_p6 = scmp.eq.s32.totalorder %s2593_s22, 1  ;;  %p3505_p7 = por %p4080_p3, %p95_p2 }
  0x10   : > { %p3509_p8 = por %p147_p4, %p89_p0  ;;  %p2594_p10 = scmp.ge.s32.totalorder %s3422_s20, 1 }
  0x11   : > { %s4099_s25 = scalar_select %p3505_p7, 1, 0 }
  0x12   : > { %s4100_s26 = scalar_select %p3509_p8, 1, 0 }
  0x13   : > { %p3513_p9 = por %p153_p6, %p95_p2  ;;  %p160_p11 = scmp.lt.s32.totalorder %s3422_s20, 3 }
  0x14   : > { %s3424_s29 = smov [#allocation3]   ;;  %p3143_p1 = scmp.lt.s32.totalorder %s3422_s20, 2 }
  0x15   : > { %s4101_s27 = scalar_select %p3513_p9, 1, 0 }
  0x16   : > { %p3519_p12 = pnand %p2594_p10, %p160_p11  ;;  %s172_s30 = sshll.u32 %s3424_s29, 4  ;;  %s3523_s30 = int_to_ptr.vmem [resolvable:$true] %s172_s30 }
  0x17   : > { %4102 = sst [smem:[#allocation17_spill]] %s4101_s27  ;;  %p3537_p4 = pnand %p3143_p1, %p3499_p5 }
  0x18   : > { %s4103_s28 = scalar_select %p3519_p12, 1, 0 }
  0x19   : > { %p3123_p13 = pneg %p3519_p12  ;;  %s31_s7 = sadd.s32 1, %s3418_s19 }
  0x1a   : > { %s4105_s6 = scalar_select %p3537_p4, 1, 0 }
  0x1b   : > { %p3531_p2 = pnand %p3123_p13, %p4080_p3  ;;  %p3542_p6 = scmp.ge.s32.totalorder %s31_s7, 2 }
  0x1c   : > { %s4107_s0 = sld [smem:[#allocation20_spill]] }
  0x1d   : > { %p4087_p11 = pneg %p3531_p2 }
  0x22   : > { %s3216_s11 = scalar_lea.hbm %s4107_s0, 256 }
  0x23   : > { %p3217_p10 = scmp.ne.s32.totalorder %s4107_s0, %s3216_s11  ;;  %p3223_p1 = scmp.lt.u32.totalorder %s3216_s11, %s4107_s0 }
  0x25   : > { %p3219_p5 = pnand %p4087_p11, %p3217_p10 }
  0x27   : > { %p3220_p13 = pneg %p3219_p5 }
  0x29   : > { %p3225_p0 = pnand %p3223_p1, %p3220_p13 }
  0x2b   : > { %3228 = shalt.err (!%p3225_p0)
}
  0x2c   : > { %s3229_s24 = scalar_lea.vmem %s3523_s30, 256  ;;  %p3237_p7 = scmp.lt.s32.totalorder %s3523_s30, %s3523_s30 }
  0x2d   : > { %p3230_p3 = scmp.ne.s32.totalorder %s3523_s30, %s3229_s24  ;;  %p3238_p10 = scmp.lt.s32.totalorder %s3229_s24, %s3229_s24 }
  0x2f   : > { %p3232_p9 = pnand %p3230_p3, %p4087_p11  ;;  %p3239_p5 = por %p3238_p10, %p3237_p7 }
  0x31   : > { %p3233_p8 = pneg %p3232_p9 }
  0x33   : > { %p3240_p12 = pnand %p3239_p5, %p3233_p8 }
  0x35   : > { %3243 = shalt.err (!%p3240_p12)
}
  0x36   : > { %s3425_s29 = smov 128   ;;  %s3426_s9 = smov 8  }
  0x37   : > { %3126 = dma.hbm_to_vmem [thread:$0]  (!%p3531_p2), %s4107_s0, 256, %s3523_s30, [#allocation4], %s3425_s29, %s3425_s29, %s3426_s9  }
  0x38   : > { %s199_s12 = sand.u32 1, %s3422_s20   ;;  %s4137_s7 = smov (%p3542_p6, %s31_s7), 0 }
  0x39   : > { %4108 = sst [smem:[#allocation18_spill]] %s4137_s7  ;;  %s201_s13 = sand.u32 1, %s3410_s17  }
  0x3a   : > { %s79_s14 = ssub.s32 %s3418_s19, %s4137_s7  ;;  %s3584_s22 = sshll.u32 %s201_s13, 6 }
  0x3b   : > { %p80_p3 = scmp.eq.s32.totalorder %s79_s14, 0  ;;  %s2696_s24 = sshll.u32 %s3418_s19, 10 }
  0x3c   : > { %s203_s23 = scalar_lea.vmem [#allocation8], %s3584_s22  ;;  %s4109_s15 = sadd.s32 1, %s3410_s17 }
  0x3d   : > { %s212_s27 = sshll.u32 %s203_s23, 4  ;;  %s4111_s2 = sld [smem:[#allocation21_spill]]  ;;  %s3600_s27 = int_to_ptr.vmem [resolvable:$true] %s212_s27 }
  0x3e   : > { %s3591_s4 = scalar_select %p80_p3, %s3410_s17, %s4109_s15  }
  0x3f   : > { %s3602_s11 = scalar_lea.sflag [#allocation4], %s199_s12  ;;  %p4090_p8 = pneg %p3537_p4 }
  0x40   : > { %4110 = sst [smem:[#allocation19_spill]] %s3591_s4 }
  0x43   : > { %s3598_s8 = scalar_lea.hbm %s4111_s2, %s2696_s24  ;;  %s3249_s14 = scalar_lea.hbm %s4111_s2, 2048 }
  0x44   : > { %s3244_s13 = scalar_lea.hbm %s3598_s8, 1024  ;;  %p3250_p0 = scmp.lt.u32.totalorder %s3598_s8, %s4111_s2 }
  0x45   : > { %p3245_p7 = scmp.ne.s32.totalorder %s3598_s8, %s3244_s13  ;;  %p3251_p6 = scmp.lt.u32.totalorder %s3249_s14, %s3244_s13 }
  0x46   : > { %p3253_p1 = scmp.lt.u32.totalorder %s3244_s13, %s3598_s8 }
  0x47   : > { %p3247_p9 = pnand %p4090_p8, %p3245_p7  ;;  %p3252_p13 = por %p3251_p6, %p3250_p0 }
  0x49   : > { %p3248_p12 = pneg %p3247_p9  ;;  %p3254_p10 = por %p3253_p1, %p3252_p13 }
  0x4b   : > { %p3255_p5 = pnand %p3254_p10, %p3248_p12 }
  0x4d   : > { %3258 = shalt.err (!%p3255_p5)
}
  0x4e   : > { %s3259_s12 = scalar_lea.vmem %s3600_s27, 1024  ;;  %s3427_s15 = smov [#allocation8]  }
  0x4f   : > { %p3260_p3 = scmp.ne.s32.totalorder %s3600_s27, %s3259_s12  ;;  %s3264_s23 = sshll.u32 %s3427_s15, 4  ;;  %s3265_s23 = int_to_ptr.vmem [resolvable:$false] %s3264_s23 }
  0x50   : > { %s3266_s30 = scalar_lea.vmem %s3265_s23, 2048  ;;  %p3267_p11 = scmp.lt.s32.totalorder %s3600_s27, %s3265_s23 }
  0x51   : > { %p3262_p7 = pnand %p3260_p3, %p4090_p8  ;;  %p3268_p0 = scmp.lt.s32.totalorder %s3266_s30, %s3259_s12 }
  0x53   : > { %p3263_p9 = pneg %p3262_p7  ;;  %p3269_p6 = por %p3268_p0, %p3267_p11 }
  0x55   : > { %p3270_p13 = pnand %p3269_p6, %p3263_p9 }
  0x57   : > { %3273 = shalt.err (!%p3270_p13)
}
  0x58   : > { %3133 = dma.hbm_to_vmem [thread:$0]  (!%p3537_p4), %s3598_s8, 1024, %s3600_s27, %s3602_s11, %s3425_s29, %s3425_s29, %s3426_s9  }
  0x59   : > { %s3428_s13 = smov [#allocation6]   ;;  %s3638_s15 = scalar_lea.hbm %s4078_s3, %s2696_s24 }
  0x5a   : > { %s185_s14 = sshll.u32 %s3428_s13, 4  ;;  %s226_s23 = scalar_lea.vmem [#allocation9], %s3584_s22  ;;  %s186_s14 = int_to_ptr.vmem [resolvable:$true] %s185_s14 }
  0x5b   : > { %s235_s30 = sshll.u32 %s226_s23, 4  ;;  %s3274_s7 = scalar_lea.hbm %s4076_s1, 256  ;;  %s3664_s30 = int_to_ptr.vmem [resolvable:$true] %s235_s30 }
  0x5c   : > { %p3275_p11 = scmp.ne.s32.totalorder %s4076_s1, %s3274_s7  ;;  %p4112_p12 = pneg %p3531_p2 }
  0x5d   : > { %p3281_p5 = scmp.lt.u32.totalorder %s3274_s7, %s4076_s1 }
  0x5e   : > { %p3277_p1 = pnand %p3275_p11, %p4112_p12 }
  0x60   : > { %p3278_p10 = pneg %p3277_p1 }
  0x62   : > { %p3283_p3 = pnand %p3281_p5, %p3278_p10 }
  0x64   : > { %3286 = shalt.err (!%p3283_p3)
}
  0x65   : > { %s3287_s22 = scalar_lea.vmem %s186_s14, 256  ;;  %p4113_p9 = pmov %p4112_p12 }
  0x66   : > { %p3288_p7 = scmp.ne.s32.totalorder %s186_s14, %s3287_s22  ;;  %p3295_p13 = scmp.lt.s32.totalorder %s186_s14, %s186_s14 }
  0x67   : > { %p3296_p8 = scmp.lt.s32.totalorder %s3287_s22, %s3287_s22 }
  0x68   : > { %p3290_p0 = pnand %p3288_p7, %p4113_p9 }
  0x69   : > { %p3297_p4 = por %p3296_p8, %p3295_p13 }
  0x6a   : > { %p3291_p6 = pneg %p3290_p0 }
  0x6c   : > { %p3298_p11 = pnand %p3297_p4, %p3291_p6 }
  0x6e   : > { %3301 = shalt.err (!%p3298_p11)
}
  0x6f   : > { %3129 = dma.hbm_to_vmem [thread:$0]  (!%p3531_p2), %s4076_s1, 256, %s186_s14, [#allocation7], %s3425_s29, %s3425_s29, %s3426_s9  }
  0x70   : > { %s3302_s4 = scalar_lea.hbm %s3638_s15, 1024  ;;  %p4114_p4 = scmp.ne.s32.totalorder %s4105_s6, 0 }
  0x71   : > { %p3303_p8 = scmp.ne.s32.totalorder %s3638_s15, %s3302_s4  ;;  %s3307_s7 = scalar_lea.hbm %s4078_s3, 2048 }
  0x72   : > { %p4115_p12 = pneg %p4114_p4  ;;  %p3308_p5 = scmp.lt.u32.totalorder %s3638_s15, %s4078_s3 }
  0x73   : > { %p3309_p3 = scmp.lt.u32.totalorder %s3307_s7, %s3302_s4  ;;  %p3311_p9 = scmp.lt.u32.totalorder %s3302_s4, %s3638_s15 }
  0x74   : > { %p3305_p1 = pnand %p3303_p8, %p4115_p12 }
  0x75   : > { %p3310_p7 = por %p3309_p3, %p3308_p5 }
  0x76   : > { %p3306_p10 = pneg %p3305_p1 }
  0x77   : > { %p3312_p2 = por %p3311_p9, %p3310_p7 }
  0x79   : > { %p3313_p0 = pnand %p3312_p2, %p3306_p10 }
  0x7b   : > { %3316 = shalt.err (!%p3313_p0)
}
  0x7c   : > { %s3317_s14 = scalar_lea.vmem %s3664_s30, 1024  ;;  %p4116_p13 = pmov %p4115_p12 }
  0x7d   : > { %p3318_p6 = scmp.ne.s32.totalorder %s3664_s30, %s3317_s14  ;;  %s3429_s10 = smov [#allocation9]  }
  0x7e   : > { %s3322_s12 = sshll.u32 %s3429_s10, 4  ;;  %s3323_s12 = int_to_ptr.vmem [resolvable:$false] %s3322_s12 }
  0x7f   : > { %p3320_p11 = pnand %p3318_p6, %p4116_p13  ;;  %s3324_s23 = scalar_lea.vmem %s3323_s12, 2048 }
  0x80   : > { %p3325_p12 = scmp.lt.s32.totalorder %s3664_s30, %s3323_s12  ;;  %p3326_p1 = scmp.lt.s32.totalorder %s3324_s23, %s3317_s14 }
  0x81   : > { %p3321_p8 = pneg %p3320_p11 }
  0x82   : > { %p3327_p5 = por %p3326_p1, %p3325_p12 }
  0x84   : > { %p3328_p3 = pnand %p3327_p5, %p3321_p8 }
  0x86   : > { %3331 = shalt.err (!%p3328_p3)
}
  0x87   : > { %3136 = dma.hbm_to_vmem [thread:$0]  (!%p4114_p4), %s3638_s15, 1024, %s3664_s30, %s3602_s11, %s3425_s29, %s3425_s29, %s3426_s9  }
  0x88   : > { %p4117_p10 = scmp.ne.s32.totalorder %s4103_s28, 0 }
  0x89   : > { %p4118_p7 = scmp.eq.s32.totalorder (!%p4117_p10), %s3488_s21, 0 }
  0x8a   : > { %247 = sbr.rel (%p4117_p10) target bundleno = 871 (0x367), region = 36 }
  0x91   : > { %3385 = dma.done.wait (%p4118_p7), [#allocation4], 256   ;;  %p4119_p9 = pmov %p4118_p7 }
  0x92   : > { %p4120_p2 = pmov %p4118_p7 }
  0x93   : > { %3387 = vsyncadd (%p4119_p9), [#allocation4], 4294967040 }
  0x94   : > { %3389 = dma.done.wait (%p4120_p2), [#allocation7], 256   ;;  %p4121_p0 = pmov %p4120_p2 }
  0x95   : > { %s257_s6 = sand.u32 1, %s3488_s21   ;;  %s3705_s29 = sand.u32 1, %s3406_s16  }
  0x96   : > { %3391 = vsyncadd (%p4121_p0), [#allocation7], 4294967040  ;;  %s2609_s28 = sshll.u32 %s3705_s29, 6  ;;  %s258_s9 = scalar_lea.sflag [#allocation4], %s257_s6 }
  0x97   : > { %s261_s11 = scalar_lea.vmem [#allocation8], %s2609_s28  ;;  %p4122_p4 = scmp.ne.s32.totalorder %s4099_s25, 0 }
  0x99   : > { %3393 = dma.done.wait (%p4122_p4), %s258_s9, 2048  }
  0x9a   : > { %3395 = vsyncadd (%p4122_p4), %s258_s9, 4294965248  ;;  %vm353_vm0 = vcmask 130048   ;;  %v311_v0 = vld [vmem:[#allocation6] sm:$0xff]  ;;  %v312_v1 = vld [vmem:[#allocation6 + $0x8] sm:$0xff]  ;;  %s270_s21 = scalar_lea.vmem [#allocation9], %s2609_s28  ;;  %s2691_s25 = sshll.u32 %s3414_s18, 2 }
  0x9b   : > { %v3712_v2 = vld [vmem:[%s261_s11] sm:$0xff]  ;;  %v3025_v3 = vpack.c.bf16 %v312_v1, %v311_v0  ;;  %v3716_v4 = vld [vmem:[%s261_s11 + $0x8] sm:$0xff]  ;;  %v3718_v5 = vld [vmem:[%s261_s11 + $0x10] sm:$0xff]  ;;  %vm2459_vm5 = vcmask 1040384   ;;  %s298_s15 = scalar_lea.vmem [#allocation10], %s3705_s29  ;;  %s2692_s27 = sshll.u32 %s3414_s18, 4 }
  0x9c   : > { %2825 = vmatprep.mubr.msk.f32.mxu0 %vm353_vm0, %v3712_v2  ;;  %v3724_v6 = vld [vmem:[%s261_s11 + $0x18] sm:$0xff]  ;;  %v3726_v7 = vld [vmem:[%s261_s11 + $0x20] sm:$0xff]  ;;  %v3732_v8 = vld [vmem:[%s261_s11 + $0x28] sm:$0xff]  ;;  %v329_v18 = vmul.f32 %v3712_v2, %v3712_v2  ;;  %v330_v20 = vmul.f32 %v3716_v4, %v3716_v4  ;;  %v331_v21 = vmul.f32 %v3718_v5, %v3718_v5  ;;  %s2477_s30 = sshll.u32 %s298_s15, 4  ;;  %s4123_s0 = sld [smem:[#allocation22_spill]]  ;;  %s4023_s30 = int_to_ptr.vmem [resolvable:$true] %s2477_s30 }
  0x9d   : > { %3026 = vmatprep.subr.bf16.mxu0 %v3025_v3  ;;  %v3734_v9 = vld [vmem:[%s261_s11 + $0x30] sm:$0xff]  ;;  %v3740_v10 = vld [vmem:[%s261_s11 + $0x38] sm:$0xff]  ;;  %v321_v11 = vld [vmem:[%s270_s21] sm:$0xff]  ;;  %v332_v22 = vmul.f32 %v3724_v6, %v3724_v6  ;;  %v333_v23 = vmul.f32 %v3726_v7, %v3726_v7  ;;  %v334_v24 = vmul.f32 %v3732_v8, %v3732_v8  ;;  %s2465_s4 = scalar_lea.sflag [#allocation5], %s3705_s29  ;;  %s3332_s17 = scalar_lea.vmem %s4023_s30, 16 }
  0x9e   : > { %3028 = vmatpush3.bf16.msra.mxu0 %v3025_v3  ;;  %v322_v12 = vld [vmem:[%s270_s21 + $0x8] sm:$0xff]  ;;  %v323_v13 = vld [vmem:[%s270_s21 + $0x10] sm:$0xff]  ;;  %v324_v14 = vld [vmem:[%s270_s21 + $0x18] sm:$0xff]  ;;  %v335_v25 = vmul.f32 %v3734_v9, %v3734_v9  ;;  %v336_v26 = vmul.f32 %v3740_v10, %v3740_v10  ;;  %v337_v27 = vmul.f32 %v321_v11, %v321_v11  ;;  %v345_v35 = vmul.f32 %v321_v11, %v3712_v2  ;;  %p3333_p6 = scmp.ne.s32.totalorder %s4023_s30, %s3332_s17  ;;  %p4124_p13 = scmp.ne.s32.totalorder %s4100_s26, 0 }
  0x9f   : > { %v325_v15 = vld [vmem:[%s270_s21 + $0x20] sm:$0xff]  ;;  %v326_v16 = vld [vmem:[%s270_s21 + $0x28] sm:$0xff]  ;;  %v327_v17 = vld [vmem:[%s270_s21 + $0x30] sm:$0xff]  ;;  %v338_v28 = vmul.f32 %v322_v12, %v322_v12  ;;  %v339_v29 = vmul.f32 %v323_v13, %v323_v13  ;;  %v340_v30 = vmul.f32 %v324_v14, %v324_v14  ;;  %v346_v36 = vmul.f32 %v322_v12, %v3716_v4  ;;  %s3431_s5 = smov [#allocation10]  }
  0xa0   : > { %v328_v19 = vld [vmem:[%s270_s21 + $0x38] sm:$0xff]  ;;  %v341_v31 = vmul.f32 %v325_v15, %v325_v15  ;;  %v342_v32 = vmul.f32 %v326_v16, %v326_v16  ;;  %v343_v33 = vmul.f32 %v327_v17, %v327_v17  ;;  %v347_v37 = vmul.f32 %v323_v13, %v3718_v5  ;;  %v3800_v43 = vld [vmem:[#allocation3] sm:$0xff]  ;;  %v3804_v49 = vld [vmem:[#allocation3 + $0x8] sm:$0xff]  ;;  %p3334_p11 = pnand %p3333_p6, %p4124_p13  ;;  %s3336_s18 = sshll.u32 %s3431_s5, 4  ;;  %s3337_s18 = int_to_ptr.vmem [resolvable:$false] %s3336_s18 }
  0xa1   : > { %2826 = vmatmul.mubr.msk.f32.vlgmr.msra.gmra.mrb[0].mxu0 %vm353_vm0, %v3716_v4  ;;  %v344_v34 = vmul.f32 %v328_v19, %v328_v19  ;;  %v348_v38 = vmul.f32 %v324_v14, %v3724_v6  ;;  %v349_v39 = vmul.f32 %v325_v15, %v3726_v7  ;;  %v350_v40 = vmul.f32 %v326_v16, %v3732_v8  ;;  %s3338_s7 = scalar_lea.vmem %s3337_s18, 32  ;;  %p3339_p12 = scmp.lt.s32.totalorder %s4023_s30, %s3337_s18 }
  0xa2   : > { %2828 = vmatprep.mubr.msk.f32.mxu0 %vm353_vm0, %v3718_v5  ;;  %v351_v41 = vmul.f32 %v327_v17, %v3734_v9  ;;  %v352_v42 = vmul.f32 %v328_v19, %v3740_v10  ;;  %2889 = vmatprep.mubr.msk.f32.mxu1 %vm353_vm0, %v3800_v43  ;;  %s4028_s2 = scalar_lea.hbm %s4123_s0, %s2692_s27  ;;  %p3335_p8 = pneg %p3334_p11 }
  0xa3   : > { %p3340_p1 = scmp.lt.s32.totalorder %s3338_s7, %s3332_s17 }
  0xa5   : > { %2829 = vmatmul.mubr.msk.f32.gmra.mrb[2].mxu0 %vm353_vm0, %v3724_v6  ;;  %p3341_p5 = por %p3340_p1, %p3339_p12 }
  0xa6   : > { %2831 = vmatprep.mubr.msk.f32.mxu0 %vm353_vm0, %v3726_v7 }
  0xa7   : > { %p3342_p3 = pnand %p3341_p5, %p3335_p8 }
  0xa9   : > { %2832 = vmatmul.mubr.msk.f32.gmra.mrb[4].mxu0 %vm353_vm0, %v3732_v8 }
  0xaa   : > { %2834 = vmatprep.mubr.msk.f32.mxu0 %vm353_vm0, %v3734_v9 }
  0xad   : > { %2835 = vmatmul.mubr.msk.f32.gmra.mrb[6].mxu0 %vm353_vm0, %v3740_v10 }
  0xae   : > { %2837 = vmatprep.mubr.msk.f32.mxu0 %vm353_vm0, %v321_v11 }
  0xb1   : > { %2838 = vmatmul.mubr.msk.f32.gmra.mrb[8].mxu0 %vm353_vm0, %v322_v12 }
  0xb2   : > { %2840 = vmatprep.mubr.msk.f32.mxu0 %vm353_vm0, %v323_v13 }
  0xb5   : > { %2841 = vmatmul.mubr.msk.f32.gmra.mrb[10].mxu0 %vm353_vm0, %v324_v14 }
  0xb6   : > { %2843 = vmatprep.mubr.msk.f32.mxu0 %vm353_vm0, %v325_v15 }
  0xb9   : > { %2844 = vmatmul.mubr.msk.f32.gmra.mrb[12].mxu0 %vm353_vm0, %v326_v16 }
  0xba   : > { %2846 = vmatprep.mubr.msk.f32.mxu0 %vm353_vm0, %v327_v17 }
  0xbd   : > { %2847 = vmatmul.mubr.msk.f32.gmra.mrb[14].mxu0 %vm353_vm0, %v328_v19 }
  0xbe   : > { %2849 = vmatprep.mubr.msk.f32.mxu0 %vm353_vm0, %v329_v18 }
  0xc1   : > { %2850 = vmatmul.mubr.msk.f32.gmra.mrb[16].mxu0 %vm353_vm0, %v330_v20 }
  0xc2   : > { %2852 = vmatprep.mubr.msk.f32.mxu0 %vm353_vm0, %v331_v21 }
  0xc5   : > { %2853 = vmatmul.mubr.msk.f32.gmra.mrb[18].mxu0 %vm353_vm0, %v332_v22 }
  0xc6   : > { %2855 = vmatprep.mubr.msk.f32.mxu0 %vm353_vm0, %v333_v23 }
  0xc9   : > { %2856 = vmatmul.mubr.msk.f32.gmra.mrb[20].mxu0 %vm353_vm0, %v334_v24 }
  0xca   : > { %2858 = vmatprep.mubr.msk.f32.mxu0 %vm353_vm0, %v335_v25 }
  0xcd   : > { %2859 = vmatmul.mubr.msk.f32.gmra.mrb[22].mxu0 %vm353_vm0, %v336_v26 }
  0xce   : > { %2861 = vmatprep.mubr.msk.f32.mxu0 %vm353_vm0, %v337_v27 }
  0xd1   : > { %2862 = vmatmul.mubr.msk.f32.gmra.mrb[24].mxu0 %vm353_vm0, %v338_v28 }
  0xd2   : > { %2864 = vmatprep.mubr.msk.f32.mxu0 %vm353_vm0, %v339_v29 }
  0xd5   : > { %2865 = vmatmul.mubr.msk.f32.gmra.mrb[26].mxu0 %vm353_vm0, %v340_v30 }
  0xd6   : > { %2867 = vmatprep.mubr.msk.f32.mxu0 %vm353_vm0, %v341_v31 }
  0xd9   : > { %2868 = vmatmul.mubr.msk.f32.gmra.mrb[28].mxu0 %vm353_vm0, %v342_v32 }
  0xda   : > { %2870 = vmatprep.mubr.msk.f32.mxu0 %vm353_vm0, %v343_v33 }
  0xdd   : > { %2871 = vmatmul.mubr.msk.f32.gmra.mrb[30].mxu0 %vm353_vm0, %v344_v34 }
  0xde   : > { %2873 = vmatprep.mubr.msk.f32.mxu0 %vm353_vm0, %v345_v35 }
  0xe1   : > { %2874 = vmatmul.mubr.msk.f32.gmra.mrb[32].mxu0 %vm353_vm0, %v346_v36 }
  0xe2   : > { %2876 = vmatprep.mubr.msk.f32.mxu0 %vm353_vm0, %v347_v37 }
  0xe5   : > { %2877 = vmatmul.mubr.msk.f32.gmra.mrb[34].mxu0 %vm353_vm0, %v348_v38 }
  0xe6   : > { %2879 = vmatprep.mubr.msk.f32.mxu0 %vm353_vm0, %v349_v39 }
  0xe9   : > { %2880 = vmatmul.mubr.msk.f32.gmra.mrb[36].mxu0 %vm353_vm0, %v350_v40 }
  0xea   : > { %2882 = vmatprep.mubr.msk.f32.mxu0 %vm353_vm0, %v351_v41  ;;  %v3430_v41 = vmov 0.0  }
  0xeb   : > { %308 = vst [vmem:[#allocation2] sm:$0x1] %v3430_v41 }
  0xed   : > { %2883 = vmatmul.mubr.msk.f32.gmra.mrb[38].mxu0 %vm353_vm0, %v352_v42 }
 0x174   : > { %v2827_v44 = vpop.f32.mrb[0].mxu0 }
 0x175   : > { %v540_v45 = vpop.f32.mrb[1].mxu0 }
 0x176   : > { %v3029_v46 = vpack.c.bf16 %v2827_v44, %v540_v45 }
 0x178   : > { %v2830_v47 = vpop.f32.mrb[2].mxu0  ;;  %3030 = vmatprep.subr.bf16.mxu1 %v3029_v46 }
 0x179   : > { %v550_v48 = vpop.f32.mrb[3].mxu0  ;;  %3032 = vmatpush3.bf16.msra.mxu1 %v3029_v46 }
 0x17a   : > { %v3033_v50 = vpack.c.bf16 %v2830_v47, %v550_v48 }
 0x17c   : > { %v2833_v51 = vpop.f32.mrb[4].mxu0  ;;  %2890 = vmatmul.mubr.msk.f32.vlgmr.msra.gmra.mrb[0].mxu1 %vm353_vm0, %v3804_v49  ;;  %3034 = vmatprep.subr.bf16.mxu1 %v3033_v50 }
 0x17d   : > { %v560_v52 = vpop.f32.mrb[5].mxu0  ;;  %3036 = vmatpush3.bf16.msra.mxu1 %v3033_v50  ;;  %2896 = vmatprep.mubr.msk.f32.mxu1 %vm353_vm0, %v3800_v43 }
 0x17e   : > { %v3037_v53 = vpack.c.bf16 %v2833_v51, %v560_v52 }
 0x180   : > { %v2836_v54 = vpop.f32.mrb[6].mxu0  ;;  %2897 = vmatmul.mubr.msk.f32.vlgmr.msra.gmra.mrb[2].mxu1 %vm353_vm0, %v3804_v49  ;;  %3038 = vmatprep.subr.bf16.mxu1 %v3037_v53 }
 0x181   : > { %v570_v55 = vpop.f32.mrb[7].mxu0  ;;  %3040 = vmatpush3.bf16.msra.mxu1 %v3037_v53  ;;  %2903 = vmatprep.mubr.msk.f32.mxu1 %vm353_vm0, %v3800_v43 }
 0x182   : > { %v3041_v56 = vpack.c.bf16 %v2836_v54, %v570_v55 }
 0x184   : > { %v2839_v57 = vpop.f32.mrb[8].mxu0  ;;  %2904 = vmatmul.mubr.msk.f32.vlgmr.msra.gmra.mrb[4].mxu1 %vm353_vm0, %v3804_v49  ;;  %3042 = vmatprep.subr.bf16.mxu1 %v3041_v56 }
 0x185   : > { %v580_v58 = vpop.f32.mrb[9].mxu0  ;;  %3044 = vmatpush3.bf16.msra.mxu1 %v3041_v56  ;;  %2910 = vmatprep.mubr.msk.f32.mxu1 %vm353_vm0, %v3800_v43 }
 0x186   : > { %v3045_v59 = vpack.c.bf16 %v2839_v57, %v580_v58 }
 0x188   : > { %v2842_v60 = vpop.f32.mrb[10].mxu0  ;;  %2911 = vmatmul.mubr.msk.f32.vlgmr.msra.gmra.mrb[6].mxu1 %vm353_vm0, %v3804_v49  ;;  %3046 = vmatprep.subr.bf16.mxu1 %v3045_v59 }
 0x189   : > { %v590_v61 = vpop.f32.mrb[11].mxu0  ;;  %3048 = vmatpush3.bf16.msra.mxu1 %v3045_v59  ;;  %2917 = vmatprep.mubr.msk.f32.mxu1 %vm353_vm0, %v3800_v43 }
 0x18a   : > { %v3049_v62 = vpack.c.bf16 %v2842_v60, %v590_v61 }
 0x18c   : > { %v2845_v63 = vpop.f32.mrb[12].mxu0  ;;  %2918 = vmatmul.mubr.msk.f32.vlgmr.msra.gmra.mrb[8].mxu1 %vm353_vm0, %v3804_v49  ;;  %3050 = vmatprep.subr.bf16.mxu1 %v3049_v62 }
 0x18d   : > { %v600_v0 = vpop.f32.mrb[13].mxu0  ;;  %3052 = vmatpush3.bf16.msra.mxu1 %v3049_v62  ;;  %2924 = vmatprep.mubr.msk.f32.mxu1 %vm353_vm0, %v3800_v43 }
 0x18e   : > { %v3053_v1 = vpack.c.bf16 %v2845_v63, %v600_v0 }
 0x190   : > { %v2848_v2 = vpop.f32.mrb[14].mxu0  ;;  %2925 = vmatmul.mubr.msk.f32.vlgmr.msra.gmra.mrb[10].mxu1 %vm353_vm0, %v3804_v49  ;;  %3054 = vmatprep.subr.bf16.mxu1 %v3053_v1 }
 0x191   : > { %v610_v3 = vpop.f32.mrb[15].mxu0  ;;  %3056 = vmatpush3.bf16.msra.mxu1 %v3053_v1  ;;  %2931 = vmatprep.mubr.msk.f32.mxu1 %vm353_vm0, %v3800_v43 }
 0x192   : > { %v3057_v4 = vpack.c.bf16 %v2848_v2, %v610_v3 }
 0x194   : > { %v2851_v5 = vpop.f32.mrb[16].mxu0  ;;  %2932 = vmatmul.mubr.msk.f32.vlgmr.msra.gmra.mrb[12].mxu1 %vm353_vm0, %v3804_v49  ;;  %3058 = vmatprep.subr.bf16.mxu1 %v3057_v4 }
 0x195   : > { %v620_v6 = vpop.f32.mrb[17].mxu0  ;;  %3060 = vmatpush3.bf16.msra.mxu1 %v3057_v4  ;;  %2938 = vmatprep.mubr.msk.f32.mxu1 %vm353_vm0, %v3800_v43 }
 0x196   : > { %v3061_v7 = vpack.c.bf16 %v2851_v5, %v620_v6 }
 0x198   : > { %v2854_v8 = vpop.f32.mrb[18].mxu0  ;;  %2939 = vmatmul.mubr.msk.f32.vlgmr.msra.gmra.mrb[14].mxu1 %vm353_vm0, %v3804_v49  ;;  %3062 = vmatprep.subr.bf16.mxu1 %v3061_v7 }
 0x199   : > { %v630_v9 = vpop.f32.mrb[19].mxu0  ;;  %3064 = vmatpush3.bf16.msra.mxu1 %v3061_v7  ;;  %2945 = vmatprep.mubr.msk.f32.mxu1 %vm353_vm0, %v3800_v43 }
 0x19a   : > { %v3065_v10 = vpack.c.bf16 %v2854_v8, %v630_v9 }
 0x19c   : > { %v2857_v11 = vpop.f32.mrb[20].mxu0  ;;  %2946 = vmatmul.mubr.msk.f32.vlgmr.msra.gmra.mrb[16].mxu1 %vm353_vm0, %v3804_v49  ;;  %3066 = vmatprep.subr.bf16.mxu1 %v3065_v10 }
 0x19d   : > { %v640_v12 = vpop.f32.mrb[21].mxu0  ;;  %3068 = vmatpush3.bf16.msra.mxu1 %v3065_v10  ;;  %2952 = vmatprep.mubr.msk.f32.mxu1 %vm353_vm0, %v3800_v43 }
 0x19e   : > { %v3069_v13 = vpack.c.bf16 %v2857_v11, %v640_v12 }
 0x1a0   : > { %v2860_v14 = vpop.f32.mrb[22].mxu0  ;;  %2953 = vmatmul.mubr.msk.f32.vlgmr.msra.gmra.mrb[18].mxu1 %vm353_vm0, %v3804_v49  ;;  %3070 = vmatprep.subr.bf16.mxu1 %v3069_v13 }
 0x1a1   : > { %v650_v15 = vpop.f32.mrb[23].mxu0  ;;  %3072 = vmatpush3.bf16.msra.mxu1 %v3069_v13  ;;  %2959 = vmatprep.mubr.msk.f32.mxu1 %vm353_vm0, %v3800_v43 }
 0x1a2   : > { %v3073_v16 = vpack.c.bf16 %v2860_v14, %v650_v15 }
 0x1a4   : > { %v2863_v17 = vpop.f32.mrb[24].mxu0  ;;  %2960 = vmatmul.mubr.msk.f32.vlgmr.msra.gmra.mrb[20].mxu1 %vm353_vm0, %v3804_v49  ;;  %3074 = vmatprep.subr.bf16.mxu1 %v3073_v16 }
 0x1a5   : > { %v660_v18 = vpop.f32.mrb[25].mxu0  ;;  %3076 = vmatpush3.bf16.msra.mxu1 %v3073_v16  ;;  %2966 = vmatprep.mubr.msk.f32.mxu1 %vm353_vm0, %v3800_v43 }
 0x1a6   : > { %v3077_v19 = vpack.c.bf16 %v2863_v17, %v660_v18 }
 0x1a8   : > { %v2866_v20 = vpop.f32.mrb[26].mxu0  ;;  %2967 = vmatmul.mubr.msk.f32.vlgmr.msra.gmra.mrb[22].mxu1 %vm353_vm0, %v3804_v49  ;;  %3078 = vmatprep.subr.bf16.mxu1 %v3077_v19 }
 0x1a9   : > { %v670_v21 = vpop.f32.mrb[27].mxu0  ;;  %3080 = vmatpush3.bf16.msra.mxu1 %v3077_v19  ;;  %2973 = vmatprep.mubr.msk.f32.mxu1 %vm353_vm0, %v3800_v43 }
 0x1aa   : > { %v3081_v22 = vpack.c.bf16 %v2866_v20, %v670_v21 }
 0x1ac   : > { %v2869_v23 = vpop.f32.mrb[28].mxu0  ;;  %2974 = vmatmul.mubr.msk.f32.vlgmr.msra.gmra.mrb[24].mxu1 %vm353_vm0, %v3804_v49  ;;  %3082 = vmatprep.subr.bf16.mxu1 %v3081_v22 }
 0x1ad   : > { %v680_v24 = vpop.f32.mrb[29].mxu0  ;;  %3084 = vmatpush3.bf16.msra.mxu1 %v3081_v22  ;;  %2980 = vmatprep.mubr.msk.f32.mxu1 %vm353_vm0, %v3800_v43 }
 0x1ae   : > { %v3085_v25 = vpack.c.bf16 %v2869_v23, %v680_v24 }
 0x1b0   : > { %v2872_v26 = vpop.f32.mrb[30].mxu0  ;;  %2981 = vmatmul.mubr.msk.f32.vlgmr.msra.gmra.mrb[26].mxu1 %vm353_vm0, %v3804_v49  ;;  %3086 = vmatprep.subr.bf16.mxu1 %v3085_v25 }
 0x1b1   : > { %v690_v27 = vpop.f32.mrb[31].mxu0  ;;  %3088 = vmatpush3.bf16.msra.mxu1 %v3085_v25  ;;  %2987 = vmatprep.mubr.msk.f32.mxu1 %vm353_vm0, %v3800_v43 }
 0x1b2   : > { %v3089_v28 = vpack.c.bf16 %v2872_v26, %v690_v27 }
 0x1b4   : > { %v2875_v29 = vpop.f32.mrb[32].mxu0  ;;  %2988 = vmatmul.mubr.msk.f32.vlgmr.msra.gmra.mrb[28].mxu1 %vm353_vm0, %v3804_v49  ;;  %3090 = vmatprep.subr.bf16.mxu1 %v3089_v28 }
 0x1b5   : > { %v700_v30 = vpop.f32.mrb[33].mxu0  ;;  %3092 = vmatpush3.bf16.msra.mxu1 %v3089_v28  ;;  %2994 = vmatprep.mubr.msk.f32.mxu1 %vm353_vm0, %v3800_v43 }
 0x1b6   : > { %v3093_v31 = vpack.c.bf16 %v2875_v29, %v700_v30 }
 0x1b8   : > { %v2878_v32 = vpop.f32.mrb[34].mxu0  ;;  %2995 = vmatmul.mubr.msk.f32.vlgmr.msra.gmra.mrb[30].mxu1 %vm353_vm0, %v3804_v49  ;;  %3094 = vmatprep.subr.bf16.mxu1 %v3093_v31 }
 0x1b9   : > { %v710_v33 = vpop.f32.mrb[35].mxu0  ;;  %3096 = vmatpush3.bf16.msra.mxu1 %v3093_v31  ;;  %3001 = vmatprep.mubr.msk.f32.mxu1 %vm353_vm0, %v3800_v43 }
 0x1ba   : > { %v3097_v34 = vpack.c.bf16 %v2878_v32, %v710_v33 }
 0x1bc   : > { %v2881_v35 = vpop.f32.mrb[36].mxu0  ;;  %3002 = vmatmul.mubr.msk.f32.vlgmr.msra.gmra.mrb[32].mxu1 %vm353_vm0, %v3804_v49  ;;  %3098 = vmatprep.subr.bf16.mxu1 %v3097_v34 }
 0x1bd   : > { %v720_v36 = vpop.f32.mrb[37].mxu0  ;;  %3100 = vmatpush3.bf16.msra.mxu1 %v3097_v34  ;;  %3008 = vmatprep.mubr.msk.f32.mxu1 %vm353_vm0, %v3800_v43 }
 0x1be   : > { %v3101_v37 = vpack.c.bf16 %v2881_v35, %v720_v36 }
 0x1c0   : > { %v2884_v38 = vpop.f32.mrb[38].mxu0  ;;  %3009 = vmatmul.mubr.msk.f32.vlgmr.msra.gmra.mrb[34].mxu1 %vm353_vm0, %v3804_v49  ;;  %3102 = vmatprep.subr.bf16.mxu1 %v3101_v37 }
 0x1c1   : > { %v730_v39 = vpop.f32.mrb[39].mxu0  ;;  %3104 = vmatpush3.bf16.msra.mxu1 %v3101_v37  ;;  %3015 = vmatprep.mubr.msk.f32.mxu1 %vm353_vm0, %v3800_v43 }
 0x1c2   : > { %v3105_v40 = vpack.c.bf16 %v2884_v38, %v730_v39 }
 0x1c4   : > { %3016 = vmatmul.mubr.msk.f32.vlgmr.msra.gmra.mrb[36].mxu1 %vm353_vm0, %v3804_v49  ;;  %3106 = vmatprep.subr.bf16.mxu1 %v3105_v40 }
 0x1c5   : > { %3108 = vmatpush3.bf16.msra.mxu1 %v3105_v40  ;;  %3022 = vmatprep.mubr.msk.f32.mxu1 %vm353_vm0, %v3800_v43 }
 0x1c8   : > { %3023 = vmatmul.mubr.msk.f32.vlgmr.msra.gmra.mrb[38].mxu1 %vm353_vm0, %v3804_v49 }
 0x24f   : > { %v2891_v42 = vpop.f32.mrb[0].mxu1 }
 0x250   : > { %v811_v44 = vpop.f32.mrb[1].mxu1  ;;  %v2246_v53 = vmul.f32 %v2891_v42, %v2891_v42 }
 0x251   : > { %v2245_v43 = vmul.f32 %v811_v44, %v811_v44 }
 0x253   : > { %v2898_v45 = vpop.f32.mrb[2].mxu1 }
 0x254   : > { %v886_v46 = vpop.f32.mrb[3].mxu1  ;;  %v2248_v61 = vmul.f32 %v2898_v45, %v2898_v45 }
 0x255   : > { %v2247_v1 = vmul.f32 %v886_v46, %v886_v46 }
 0x257   : > { %v2905_v47 = vpop.f32.mrb[4].mxu1 }
 0x258   : > { %v961_v48 = vpop.f32.mrb[5].mxu1  ;;  %v3894_v7 = vmul.f32 %v2905_v47, %v2905_v47 }
 0x259   : > { %v3900_v11 = vmul.f32 %v961_v48, %v961_v48 }
 0x25b   : > { %v2912_v50 = vpop.f32.mrb[6].mxu1 }
 0x25c   : > { %v1036_v51 = vpop.f32.mrb[7].mxu1  ;;  %v3914_v17 = vmul.f32 %v2912_v50, %v2912_v50 }
 0x25d   : > { %v3920_v21 = vmul.f32 %v1036_v51, %v1036_v51 }
 0x25f   : > { %v2919_v52 = vpop.f32.mrb[8].mxu1 }
 0x260   : > { %v2254_v54 = vmul.f32 %v2919_v52, %v2919_v52  ;;  %v3884_v55 = vmul.f32 %v2919_v52, %v2891_v42  ;;  %v1111_v56 = vpop.f32.mrb[9].mxu1 }
 0x261   : > { %v2253_v57 = vmul.f32 %v1111_v56, %v1111_v56  ;;  %v3886_v58 = vmul.f32 %v1111_v56, %v811_v44 }
 0x262   : > { %v2334_v49 = vadd.f32 %v2254_v54, %v2246_v53 }
 0x263   : > { %v2333_v59 = vadd.f32 %v2253_v57, %v2245_v43  ;;  %v2926_v60 = vpop.f32.mrb[10].mxu1 }
 0x264   : > { %v2256_v62 = vmul.f32 %v2926_v60, %v2926_v60  ;;  %v3888_v63 = vmul.f32 %v2926_v60, %v2898_v45  ;;  %v1186_v0 = vpop.f32.mrb[11].mxu1 }
 0x265   : > { %v2255_v2 = vmul.f32 %v1186_v0, %v1186_v0  ;;  %v3890_v3 = vmul.f32 %v1186_v0, %v886_v46 }
 0x266   : > { %v2336_v4 = vadd.f32 %v2256_v62, %v2248_v61 }
 0x267   : > { %v3892_v5 = vadd.f32 %v2255_v2, %v2247_v1  ;;  %v2933_v6 = vpop.f32.mrb[12].mxu1 }
 0x268   : > { %v3896_v8 = vmul.f32 %v2933_v6, %v2933_v6  ;;  %v3898_v9 = vmul.f32 %v2933_v6, %v2905_v47  ;;  %v1261_v10 = vpop.f32.mrb[13].mxu1  ;;  %v3939_v6 = vstv %s2691_s25 }
 0x269   : > { %v3902_v12 = vmul.f32 %v1261_v10, %v1261_v10  ;;  %v3904_v13 = vmul.f32 %v1261_v10, %v961_v48  ;;  %vm2418_vm1 = vcmp.lt.s32.totalorder %v3939_v6, 8 }
 0x26a   : > { %v3908_v14 = vadd.f32 %v3896_v8, %v3894_v7 }
 0x26b   : > { %v3912_v15 = vadd.f32 %v3902_v12, %v3900_v11  ;;  %v2940_v16 = vpop.f32.mrb[14].mxu1 }
 0x26c   : > { %v3916_v18 = vmul.f32 %v2940_v16, %v2940_v16  ;;  %v3918_v19 = vmul.f32 %v2940_v16, %v2912_v50  ;;  %v1336_v20 = vpop.f32.mrb[15].mxu1 }
 0x26d   : > { %v3922_v22 = vmul.f32 %v1336_v20, %v1336_v20  ;;  %v3924_v23 = vmul.f32 %v1336_v20, %v1036_v51  ;;  %v2342_v51 = vadd.f32 0.0001, %v2334_v49  ;;  %v2294_v20 = vmul.f32 2.0, %v3884_v55 }
 0x26e   : > { %v3928_v24 = vadd.f32 %v3916_v18, %v3914_v17 }
 0x26f   : > { %v3932_v25 = vadd.f32 %v3922_v22, %v3920_v21  ;;  %v2947_v26 = vpop.f32.mrb[16].mxu1 }
 0x270   : > { %v2270_v27 = vsub.f32 %v2947_v26, %v2246_v53  ;;  %v1411_v28 = vpop.f32.mrb[17].mxu1 }
 0x271   : > { %v2269_v29 = vsub.f32 %v1411_v28, %v2245_v43  ;;  %v2341_v43 = vadd.f32 0.0001, %v2333_v59  ;;  %v2343_v59 = vadd.f32 0.0001, %v3892_v5  ;;  %v2296_v28 = vmul.f32 2.0, %v3888_v63 }
 0x273   : > { %v2954_v30 = vpop.f32.mrb[18].mxu1 }
 0x274   : > { %v2272_v31 = vsub.f32 %v2954_v30, %v2248_v61  ;;  %v1486_v32 = vpop.f32.mrb[19].mxu1  ;;  %v2346_v30 = vadd.f32 0.0001, %v3908_v14 }
 0x275   : > { %v2271_v33 = vsub.f32 %v1486_v32, %v2247_v1 }
 0x277   : > { %v2961_v34 = vpop.f32.mrb[20].mxu1 }
 0x278   : > { %v2274_v35 = vsub.f32 %v2961_v34, %v3894_v7  ;;  %v1561_v36 = vpop.f32.mrb[21].mxu1 }
 0x279   : > { %v2273_v37 = vsub.f32 %v1561_v36, %v3900_v11  ;;  %v2344_v11 = vadd.f32 0.0001, %v2336_v4  ;;  %v2293_v4 = vmul.f32 2.0, %v3886_v58  ;;  %v2302_v36 = vadd.f32 0.0001, %v2294_v20 }
 0x27b   : > { %v2968_v38 = vpop.f32.mrb[22].mxu1  ;;  %v2301_v14 = vadd.f32 0.0001, %v2293_v4 }
 0x27c   : > { %v2276_v39 = vsub.f32 %v2968_v38, %v3914_v17  ;;  %v1636_v40 = vpop.f32.mrb[23].mxu1  ;;  %v2295_v38 = vmul.f32 2.0, %v3890_v3 }
 0x27d   : > { %v2275_v41 = vsub.f32 %v1636_v40, %v3920_v21 }
 0x27f   : > { %v2975_v42 = vpop.f32.mrb[24].mxu1 }
 0x280   : > { %v2278_v44 = vsub.f32 %v2975_v42, %v2254_v54  ;;  %v1711_v45 = vpop.f32.mrb[25].mxu1  ;;  %v2304_v42 = vadd.f32 0.0001, %v2296_v28 }
 0x281   : > { %v2277_v46 = vsub.f32 %v1711_v45, %v2253_v57  ;;  %v3942_v57 = vadd.s32 1, %v3939_v6 }
 0x282   : > { %v2350_v47 = vadd.f32 %v2278_v44, %v2270_v27  ;;  %v3951_v27 = vadd.s32 2, %v3939_v6 }
 0x283   : > { %v2349_v48 = vadd.f32 %v2277_v46, %v2269_v29  ;;  %v2982_v50 = vpop.f32.mrb[26].mxu1  ;;  %v2348_v46 = vadd.f32 0.0001, %v3928_v24  ;;  %vm2419_vm2 = vcmp.lt.s32.totalorder %v3942_v57, 8 }
 0x284   : > { %v2358_v52 = vadd.f32 0.0009, %v2350_v47  ;;  %v2280_v53 = vsub.f32 %v2982_v50, %v2256_v62  ;;  %v1786_v56 = vpop.f32.mrb[27].mxu1  ;;  %vm2420_vm3 = vcmp.lt.s32.totalorder %v3951_v27, 8 }
 0x285   : > { %v2357_v60 = vadd.f32 0.0009, %v2349_v48  ;;  %v2279_v61 = vsub.f32 %v1786_v56, %v2255_v2  ;;  %v2347_v48 = vadd.f32 0.0001, %v3932_v25 }
 0x286   : > { %v2366_v0 = vmul.f32 %v2358_v52, %v2342_v51  ;;  %v2352_v1 = vadd.f32 %v2280_v53, %v2272_v31  ;;  %v2298_v52 = vmul.f32 2.0, %v3898_v9 }
 0x287   : > { %v2365_v7 = vmul.f32 %v2357_v60, %v2341_v43  ;;  %v2351_v10 = vadd.f32 %v2279_v61, %v2271_v33  ;;  %v2989_v54 = vpop.f32.mrb[28].mxu1  ;;  %v2345_v33 = vadd.f32 0.0001, %v3912_v15 }
 0x288   : > { %3200 = vrcp.f32 %v2366_v0  ;;  %v2360_v16 = vadd.f32 0.0009, %v2352_v1  ;;  %v2282_v49 = vsub.f32 %v2989_v54, %v3896_v8  ;;  %v1861_v62 = vpop.f32.mrb[29].mxu1 }
 0x289   : > { %3202 = vrcp.f32 %v2365_v7  ;;  %v2359_v2 = vadd.f32 0.0009, %v2351_v10  ;;  %v2281_v17 = vsub.f32 %v1861_v62, %v3902_v12  ;;  %v2306_v62 = vadd.f32 0.0001, %v2298_v52 }
 0x28a   : > { %v3948_v21 = vmul.f32 %v2360_v16, %v2344_v11  ;;  %v2354_v26 = vadd.f32 %v2282_v49, %v2274_v35 }
 0x28b   : > { %v3955_v8 = vmul.f32 %v2359_v2, %v2343_v59  ;;  %v2353_v29 = vadd.f32 %v2281_v17, %v2273_v37  ;;  %v2996_v5 = vpop.f32.mrb[30].mxu1 }
 0x28c   : > { %3204 = vrcp.f32 %v3948_v21  ;;  %v2362_v12 = vadd.f32 0.0009, %v2354_v26  ;;  %v2284_v31 = vsub.f32 %v2996_v5, %v3916_v18  ;;  %v1936_v32 = vpop.f32.mrb[31].mxu1 }
 0x28d   : > { %3206 = vrcp.f32 %v3955_v8  ;;  %v2361_v34 = vadd.f32 0.0009, %v2353_v29  ;;  %v2283_v35 = vsub.f32 %v1936_v32, %v3922_v22 }
 0x28e   : > { %v3964_v37 = vmul.f32 %v2362_v12, %v2346_v30  ;;  %v2356_v40 = vadd.f32 %v2284_v31, %v2276_v39 }
 0x28f   : > { %v3966_v44 = vmul.f32 %v2361_v34, %v2345_v33  ;;  %v2355_v45 = vadd.f32 %v2283_v35, %v2275_v41  ;;  %v3003_v18 = vpop.f32.mrb[32].mxu1  ;;  %v2303_v41 = vadd.f32 0.0001, %v2295_v38 }
 0x290   : > { %3208 = vrcp.f32 %v3964_v37  ;;  %v2364_v15 = vadd.f32 0.0009, %v2356_v40  ;;  %v2286_v47 = vsub.f32 %v3003_v18, %v3884_v55  ;;  %v2011_v22 = vpop.f32.mrb[33].mxu1  ;;  %v2297_v55 = vmul.f32 2.0, %v3904_v13 }
 0x291   : > { %3210 = vrcp.f32 %v3966_v44  ;;  %v2363_v39 = vadd.f32 0.0009, %v2355_v45  ;;  %v2285_v50 = vsub.f32 %v2011_v22, %v3886_v58 }
 0x292   : > { %v3201_v51 = vpop.eup %3200  ;;  %v3976_v24 = vmul.f32 %v2364_v15, %v2348_v46  ;;  %v2310_v53 = vmul.f32 2.0, %v2286_v47 }
 0x293   : > { %v3203_v56 = vpop.eup %3202  ;;  %v2382_v43 = vmul.f32 %v3201_v51, %v2366_v0  ;;  %v3979_v60 = vmul.f32 %v2363_v39, %v2347_v48  ;;  %v2309_v61 = vmul.f32 2.0, %v2285_v50  ;;  %v3010_v25 = vpop.f32.mrb[34].mxu1 }
 0x294   : > { %v2381_v1 = vmul.f32 %v3203_v56, %v2365_v7  ;;  %3212 = vrcp.f32 %v3976_v24  ;;  %v2318_v10 = vadd.f32 0.0009, %v2310_v53  ;;  %v2288_v58 = vsub.f32 %v3010_v25, %v3888_v63  ;;  %v2086_v54 = vpop.f32.mrb[35].mxu1 }
 0x295   : > { %v2390_v11 = vsub.f32 2.0, %v2382_v43  ;;  %3214 = vrcp.f32 %v3979_v60  ;;  %v2317_v16 = vadd.f32 0.0009, %v2309_v61  ;;  %v2287_v49 = vsub.f32 %v2086_v54, %v3890_v3 }
 0x296   : > { %v3205_v0 = vpop.eup %3204  ;;  %v2389_v59 = vsub.f32 2.0, %v2381_v1  ;;  %v2326_v2 = vmul.f32 %v2318_v10, %v2302_v36  ;;  %v2312_v17 = vmul.f32 2.0, %v2288_v58  ;;  %v2305_v61 = vadd.f32 0.0001, %v2297_v55 }
 0x297   : > { %v3207_v7 = vpop.eup %3206  ;;  %v2384_v20 = vmul.f32 %v3205_v0, %v3948_v21  ;;  %v2398_v26 = vmul.f32 %v3201_v51, %v2390_v11  ;;  %v2325_v4 = vmul.f32 %v2317_v16, %v2301_v14  ;;  %v2311_v63 = vmul.f32 2.0, %v2287_v49  ;;  %v3017_v28 = vpop.f32.mrb[36].mxu1 }
 0x298   : > { %v2383_v29 = vmul.f32 %v3207_v7, %v3955_v8  ;;  %v2397_v5 = vmul.f32 %v3203_v56, %v2389_v59  ;;  %v2320_v30 = vadd.f32 0.0009, %v2312_v17  ;;  %v2290_v12 = vsub.f32 %v3017_v28, %v3898_v9  ;;  %v2161_v31 = vpop.f32.mrb[37].mxu1 }
 0x299   : > { %v2392_v3 = vsub.f32 2.0, %v2384_v20  ;;  %v2406_v32 = vmul.f32 %v2398_v26, %v2326_v2  ;;  %v2319_v33 = vadd.f32 0.0009, %v2311_v63  ;;  %v2289_v34 = vsub.f32 %v2161_v31, %v3904_v13 }
 0x29a   : > { %v3209_v35 = vpop.eup %3208  ;;  %v2391_v36 = vsub.f32 2.0, %v2383_v29  ;;  %v2405_v38 = vmul.f32 %v2397_v5, %v2325_v4  ;;  %v2328_v21 = vmul.f32 %v2320_v30, %v2304_v42  ;;  %v2314_v40 = vmul.f32 2.0, %v2290_v12 }
 0x29b   : > { %v3211_v14 = vpop.eup %3210  ;;  %v2386_v45 = vmul.f32 %v3209_v35, %v3964_v37  ;;  %v2423_v8 = vsel %vm2418_vm1, %v2406_v32, 0.0  ;;  %v2400_v18 = vmul.f32 %v3205_v0, %v2392_v3  ;;  %v2327_v46 = vmul.f32 %v2319_v33, %v2303_v41  ;;  %v3024_v9 = vpop.f32.mrb[38].mxu1 }
 0x29c   : > { %v2385_v15 = vmul.f32 %v3211_v14, %v3966_v44  ;;  %v2431_v13 = vsel %vm353_vm0, %v2423_v8, 0.0  ;;  %v2422_v47 = vsel %vm2418_vm1, %v2405_v38, 0.0  ;;  %v2399_v42 = vmul.f32 %v3207_v7, %v2391_v36  ;;  %v2236_v22 = vpop.f32.mrb[39].mxu1 }
 0x29d   : > { %v2394_v48 = vsub.f32 2.0, %v2386_v45  ;;  %v2430_v37 = vsel %vm353_vm0, %v2422_v47, 0.0  ;;  %v2408_v39 = vmul.f32 %v2400_v18, %v2328_v21  ;;  %v2322_v50 = vadd.f32 0.0009, %v2314_v40 }
 0x29e   : > { %v3213_v51 = vpop.eup %3212  ;;  %v2393_v52 = vsub.f32 2.0, %v2385_v15  ;;  %v2432_v41 = vadd.f32 %v2431_v13, %v2430_v37  ;;  %v2407_v53 = vmul.f32 %v2399_v42, %v2327_v46  ;;  %v2313_v56 = vmul.f32 2.0, %v2289_v34 }
 0x29f   : > { %v3215_v43 = vpop.eup %3214  ;;  %v2388_v44 = vmul.f32 %v3213_v51, %v3976_v24  ;;  %v2330_v25 = vmul.f32 %v2322_v50, %v2306_v62  ;;  %v2402_v1 = vmul.f32 %v3209_v35, %v2394_v48  ;;  %v2425_v58 = vsel %vm2419_vm2, %v2408_v39, 0.0 }
 0x2a0   : > { %v2387_v10 = vmul.f32 %v3215_v43, %v3979_v60  ;;  %v2424_v54 = vsel %vm2419_vm2, %v2407_v53, 0.0  ;;  %v2321_v11 = vadd.f32 0.0009, %v2313_v56  ;;  %v2300_v16 = vmul.f32 2.0, %v3918_v19 }
 0x2a1   : > { %v2433_v49 = vsel %vm353_vm0, %v2424_v54, 0.0  ;;  %v2410_v0 = vmul.f32 %v2402_v1, %v2330_v25  ;;  %v2401_v59 = vmul.f32 %v3211_v14, %v2393_v52  ;;  %v2396_v55 = vsub.f32 2.0, %v2388_v44 }
 0x2a2   : > { %v2434_v2 = vadd.f32 %v2433_v49, %v2432_v41  ;;  %v2329_v24 = vmul.f32 %v2321_v11, %v2305_v61  ;;  %v2292_v62 = vsub.f32 %v3024_v9, %v3918_v19  ;;  %v2299_v60 = vmul.f32 2.0, %v3924_v23 }
 0x2a3   : > { %v2395_v17 = vsub.f32 2.0, %v2387_v10  ;;  %v2435_v7 = vsel %vm353_vm0, %v2425_v58, 0.0  ;;  %v2291_v57 = vsub.f32 %v2236_v22, %v3924_v23  ;;  %v2308_v63 = vadd.f32 0.0001, %v2300_v16  ;;  %v2452_v22 = vld [vmem:[#allocation2] sm:$0x1] }
 0x2a4   : > { %v2409_v20 = vmul.f32 %v2401_v59, %v2329_v24  ;;  %v2436_v26 = vadd.f32 %v2435_v7, %v2434_v2  ;;  %v2316_v4 = vmul.f32 2.0, %v2292_v62  ;;  %v2417_v28 = vadd.s32 3, %v3939_v6 }
 0x2a5   : > { %v2315_v29 = vmul.f32 2.0, %v2291_v57  ;;  %v2427_v5 = vsel %vm2420_vm3, %v2410_v0, 0.0  ;;  %v2404_v12 = vmul.f32 %v3213_v51, %v2396_v55  ;;  %v2307_v31 = vadd.f32 0.0001, %v2299_v60 }
 0x2a6   : > { %v2426_v19 = vsel %vm2420_vm3, %v2409_v20, 0.0  ;;  %v2324_v30 = vadd.f32 0.0009, %v2316_v4  ;;  %v2403_v23 = vmul.f32 %v3215_v43, %v2395_v17  ;;  %v2439_v35 = vsel %vm353_vm0, %v2427_v5, 0.0 }
 0x2a7   : > { %v2437_v3 = vsel %vm353_vm0, %v2426_v19, 0.0  ;;  %v2323_v32 = vadd.f32 0.0009, %v2315_v29  ;;  %vm2421_vm4 = vcmp.lt.s32.totalorder %v2417_v28, 8 }
 0x2a8   : > { %v2438_v33 = vadd.f32 %v2437_v3, %v2436_v26  ;;  %v2332_v34 = vmul.f32 %v2324_v30, %v2308_v63 }
 0x2a9   : > { %v2331_v36 = vmul.f32 %v2323_v32, %v2307_v31 }
 0x2aa   : > { %v2412_v6 = vmul.f32 %v2404_v12, %v2332_v34  ;;  %v2440_v38 = vadd.f32 %v2439_v35, %v2438_v33 }
 0x2ab   : > { %v2411_v21 = vmul.f32 %v2403_v23, %v2331_v36 }
 0x2ac   : > { %v2429_v40 = vsel %vm2421_vm4, %v2412_v6, 0.0 }
 0x2ad   : > { %v2428_v14 = vsel %vm2421_vm4, %v2411_v21, 0.0  ;;  %v2443_v8 = vsel %vm353_vm0, %v2429_v40, 0.0 }
 0x2ae   : > { %v2441_v27 = vsel %vm353_vm0, %v2428_v14, 0.0 }
 0x2af   : > { %v2442_v45 = vadd.f32 %v2441_v27, %v2440_v38 }
 0x2b1   : > { %v2444_v18 = vadd.f32 %v2443_v8, %v2442_v45 }
 0x2b3   : > { %v2445_v46 = vrot.slane %v2444_v18, 4 }
 0x2b5   : > { %v2446_v9 = vadd.f32 %v2445_v46, %v2444_v18 }
 0x2b7   : > { %v2447_v15 = vrot.slane %v2446_v9, 2 }
 0x2b9   : > { %v2448_v13 = vadd.f32 %v2447_v15, %v2446_v9 }
 0x2bb   : > { %v2449_v47 = vrot.slane %v2448_v13, 1 }
 0x2bd   : > { %v2450_v42 = vadd.f32 %v2449_v47, %v2448_v13 }
 0x2bf   : > { %v2451_v48 = vsel %vm353_vm0, %v2450_v42, 0.0 }
 0x2c0   : > { %v2453_v37 = vadd.f32 %v2452_v22, %v2451_v48 }
 0x2c2   : > { %2454 = vst [vmem:[#allocation2] sm:$0x1] %v2453_v37 }
 0x2c9   : > { %v2458_v39 = vld [vmem:[#allocation2] sm:$0x1] }
 0x2ca   : > { %v2460_v50 = vsel %vm2459_vm5, %v2458_v39, 0.0 }
 0x2cb   : > { %2461 = vadd.xlane.f32.xlu0 %v2460_v50 }
 0x358   : > { %v2462_v51 = vpop.xlane.xlu0 %2461 }
 0x359   : > { %2463 = vst [vmem:[%s298_s15] sm:$0x1] %v2462_v51 }
 0x35a   : > { %3345 = shalt.err (!%p3342_p3)
}
 0x35b   : > { %s3346_s24 = scalar_lea.hbm %s4028_s2, 16  ;;  %s3350_s10 = scalar_lea.hbm %s4123_s0, 32 }
 0x35c   : > { %p3347_p10 = scmp.ne.s32.totalorder %s4028_s2, %s3346_s24  ;;  %p3351_p2 = scmp.lt.u32.totalorder %s4028_s2, %s4123_s0 }
 0x35d   : > { %p3352_p0 = scmp.lt.u32.totalorder %s3350_s10, %s3346_s24  ;;  %p3354_p6 = scmp.lt.u32.totalorder %s3346_s24, %s4028_s2 }
 0x35e   : > { %p3348_p7 = pnand %p3347_p10, %p4124_p13 }
 0x35f   : > { %p3353_p4 = por %p3352_p0, %p3351_p2 }
 0x360   : > { %p3349_p9 = pneg %p3348_p7 }
 0x361   : > { %p3355_p11 = por %p3354_p6, %p3353_p4 }
 0x363   : > { %p3356_p8 = pnand %p3355_p11, %p3349_p9 }
 0x365   : > { %3359 = shalt.err (!%p3356_p8)
}
 0x366   : > { %3121 = dma.vmem_to_hbm [thread:$0]  (%p4124_p13), %s4023_s30, 16, %s4028_s2, %s2465_s4  }
 0x367 PF: > { %s4125_s6 = sld [smem:[#allocation15_spill]]  ;;  %s4126_s29 = sld [smem:[#allocation17_spill]] }
 0x368   : > { %p4128_p1 = scmp.ge.s32.totalorder %s3422_s20, 2 }
 0x36d   : > { %s2489_s28 = sand.u32 1, %s4125_s6   ;;  %p4127_p12 = scmp.ne.s32.totalorder %s4126_s29, 0 }
 0x36e   : > { %s2490_s9 = scalar_lea.sflag [#allocation5], %s2489_s28 }
 0x36f   : > { %p3138_p5 = pnand %p4128_p1, %p4127_p12 }
 0x371   : > { %3397 = dma.done.wait (!%p3138_p5), %s2490_s9, 16  }
 0x372   : > { %3399 = vsyncadd (!%p3138_p5), %s2490_s9, 4294967280  ;;  %s19_s20 = sadd.s32 1, %s3422_s20   ;;  %s4129_s11 = sld [smem:[#allocation16_spill]] }
 0x373   : > { %p16_p3 = scmp.ge.s32.totalorder %s19_s20, 4   ;;  %s4130_s17 = sld [smem:[#allocation19_spill]] }
 0x374   : > { %s4131_s26 = sld [smem:[#allocation18_spill]]  ;;  %s4132_s15 = smov %s3406_s16 }
 0x375   : > { %s4134_s18 = smov %s3418_s19  ;;  %18 = sbr.rel (!%p16_p3) target bundleno = 10 (0xa), region = 107 }
 0x378   : > { %s4133_s16 = smov %s4129_s11 }
 0x37a   : > { %s4135_s19 = smov %s4131_s26 }
 0x37c   :  { %2494 = vsyncpa [#allocation4], 1 }
 0x37d   :  { %2496 = vsyncpa [#allocation4 + $0x1], 1 }
 0x37e   :  { %2497 = vsyncpa [#allocation7], 1 }
 0x37f   :  { %2498 = vsyncpa [#allocation5], 1 }
 0x380   :  { %2500 = vsyncpa [#allocation5 + $0x1], 1 }

</bundles_post_ra>
